<compile_context>
chip_gen: v5e
topology: v5e:2x2
jax: 0.10.0
libtpu: 0.0.40
codegen_flags: <defaults>
</compile_context>

<pallas_src>
import functools

import jax
import jax.numpy as jnp
from jax import lax
from jax.experimental import pallas as pl
from jax.experimental.pallas import tpu as pltpu


def _round_up(n, m):
    return ((n + m - 1) // m) * m


# ---------------------------------------------------------------------------
# Parameter slab packing (wrapper side, plain XLA).
# ---------------------------------------------------------------------------
def _pack_params(params, E, H, O):
    """Pack all decoder parameters into one (rows, 128) f32 slab.

    Layout (each piece starts on an 8-row boundary, lanes start at 0):
      [r_wih : r_wih+E , 0:3H]  W_ih packed (E, 3H), gate order (r, z, n)
      [r_whh : r_whh+H , 0:3H]  W_hh packed (H, 3H)
      [r_bc            , 0:3H]  b_ih + [b_hr, b_hz, 0]   (folded r/z hh-bias)
      [r_bhn           , 0:H ]  b_hn
      [r_wlin: r_wlin+H, 0:O ]  W_lin (H, O)
      [r_blin          , 0:O ]  b_lin (1, O)
    """
    H3 = 3 * H
    lanes = _round_up(max(H3, O), 128)

    r_wih = 0
    r_whh = r_wih + _round_up(E, 8)
    r_bc = r_whh + _round_up(H, 8)
    r_bhn = r_bc + 8
    r_wlin = r_bhn + 8
    r_blin = r_wlin + _round_up(H, 8)
    rows = r_blin + 8

    w_ih = jnp.concatenate([params["W_ih"][g] for g in range(3)], axis=1)  # (E,3H)
    w_hh = jnp.concatenate([params["W_hh"][g] for g in range(3)], axis=1)  # (H,3H)
    b_ih = jnp.concatenate([params["b_ih"][g] for g in range(3)], axis=1)  # (1,3H)
    b_comb = b_ih + jnp.concatenate(
        [params["b_hh"][0], params["b_hh"][1],
         jnp.zeros((1, H), jnp.float32)], axis=1)                          # (1,3H)
    b_hn = params["b_hh"][2]                                               # (1,H)

    slab = jnp.zeros((rows, lanes), jnp.float32)
    slab = slab.at[r_wih:r_wih + E, 0:H3].set(w_ih)
    slab = slab.at[r_whh:r_whh + H, 0:H3].set(w_hh)
    slab = slab.at[r_bc:r_bc + 1, 0:H3].set(b_comb)
    slab = slab.at[r_bhn:r_bhn + 1, 0:H].set(b_hn)
    slab = slab.at[r_wlin:r_wlin + H, 0:O].set(params["W_lin"])
    slab = slab.at[r_blin:r_blin + 1, 0:O].set(params["b_lin"])

    layout = dict(r_wih=r_wih, r_whh=r_whh, r_bc=r_bc, r_bhn=r_bhn,
                  r_wlin=r_wlin, r_blin=r_blin)
    return slab, layout


# ---------------------------------------------------------------------------
# Kernel.
# ---------------------------------------------------------------------------
def _make_kernel(B, T, E, H, O, lay):
    H3 = 3 * H
    r_wih, r_whh = lay["r_wih"], lay["r_whh"]
    r_bc, r_bhn = lay["r_bc"], lay["r_bhn"]
    r_wlin, r_blin = lay["r_wlin"], lay["r_blin"]

    def kernel(x_ref, p_ref, out_ref, hs_ref):
        """x_ref: (B,E); p_ref: packed slab; out_ref: (T*B,O); hs_ref: (T*B,H)."""
        x = x_ref[...]                                          # (B, E)

        w_ih = p_ref[r_wih:r_wih + E, 0:H3]                     # (E, 3H)
        w_hh = p_ref[r_whh:r_whh + H, 0:H3]                     # (H, 3H)
        b_c = p_ref[r_bc:r_bc + 1, 0:H3]                        # (1, 3H)
        b_hn = p_ref[r_bhn:r_bhn + 1, 0:H]                      # (1, H)
        w_lin = p_ref[r_wlin:r_wlin + H, 0:O]                   # (H, O)
        b_lin = p_ref[r_blin:r_blin + 1, 0:O]                   # (1, O)

        # Timestep-invariant input projection, one MXU push; r/z hh-biases
        # are already folded into b_c.
        gi = jnp.dot(x, w_ih, preferred_element_type=jnp.float32) + b_c
        gi_r = gi[:, 0:H]
        gi_z = gi[:, H:2 * H]
        gi_n = gi[:, 2 * H:3 * H]

        # --- step 0 peeled: h0 == 0 -> no matmul needed -------------------
        r = jax.nn.sigmoid(gi_r)
        z = jax.nn.sigmoid(gi_z)
        n = jnp.tanh(gi_n + r * b_hn)
        h = (1.0 - z) * n
        hs_ref[0:B, :] = h

        # --- steps 1..T-1: single packed (B,H)@(H,3H) push per step -------
        for t in range(1, T):
            gh = jnp.dot(h, w_hh, preferred_element_type=jnp.float32)  # (B, 3H)
            r = jax.nn.sigmoid(gi_r + gh[:, 0:H])
            z = jax.nn.sigmoid(gi_z + gh[:, H:2 * H])
            n = jnp.tanh(gi_n + r * (gh[:, 2 * H:3 * H] + b_hn))
            h = (1.0 - z) * n + z * h
            hs_ref[t * B:(t + 1) * B, :] = h

        # Hoisted Linear: one matmul over all timesteps, one store.
        y = jnp.dot(hs_ref[...], w_lin,
                    preferred_element_type=jnp.float32) + b_lin        # (T*B, O)
        out_ref[...] = y

    return kernel


# ---------------------------------------------------------------------------
# Wrapper.
# ---------------------------------------------------------------------------
@functools.partial(jax.jit, static_argnames=("length",))
def decoder_forward(x, params, length):
    """x: (B, E) float32 -> (B, length, O) float32, matching the PyTorch Decoder."""
    B, E = x.shape
    H = params["W_hh"].shape[1]
    O = params["W_lin"].shape[1]

    slab, layout = _pack_params(params, E, H, O)
    kernel = _make_kernel(B, length, E, H, O, layout)

    vmem = pl.BlockSpec(memory_space=pltpu.MemorySpace.VMEM)
    out_flat = pl.pallas_call(
        kernel,
        out_shape=jax.ShapeDtypeStruct((length * B, O), jnp.float32),
        in_specs=[vmem, vmem],
        out_specs=vmem,
        scratch_shapes=[pltpu.VMEM((length * B, H), jnp.float32)],
    )(x, slab)

    # (T*B, O) time-major -> (B, T, O) batch_first; negligible at these sizes.
    return jnp.transpose(out_flat.reshape(length, B, O), (1, 0, 2))


# ---------------------------------------------------------------------------
# Pure-JAX reference (identical math; torch GRU gate order r, z, n).
# ---------------------------------------------------------------------------
def decoder_reference(x, params, length):
    w_ir, w_iz, w_in = params["W_ih"][0], params["W_ih"][1], params["W_ih"][2]
    w_hr, w_hz, w_hn = params["W_hh"][0], params["W_hh"][1], params["W_hh"][2]
    b_ir, b_iz, b_in = params["b_ih"][0], params["b_ih"][1], params["b_ih"][2]
    b_hr, b_hz, b_hn = params["b_hh"][0], params["b_hh"][1], params["b_hh"][2]

    gi_r = x @ w_ir + b_ir
    gi_z = x @ w_iz + b_iz
    gi_n = x @ w_in + b_in

    def step(h, _):
        r = jax.nn.sigmoid(gi_r + h @ w_hr + b_hr)
        z = jax.nn.sigmoid(gi_z + h @ w_hz + b_hz)
        n = jnp.tanh(gi_n + r * (h @ w_hn + b_hn))
        h_new = (1.0 - z) * n + z * h
        y = h_new @ params["W_lin"] + params["b_lin"]
        return h_new, y

    h0 = jnp.zeros((x.shape[0], w_hr.shape[0]), dtype=jnp.float32)
    _, ys = lax.scan(step, h0, None, length=length)   # ys: (T, B, O)
    return jnp.transpose(ys, (1, 0, 2))


def init_params(key, embedding_dim, hidden_dim, output_dim):
    """Synthetic PyTorch-style params with the gate axis leading (order r, z, n).

    W_ih[g] is the transpose of torch's weight_ih_l0[g*H:(g+1)*H, :], etc.
    """
    ks = jax.random.split(key, 6)
    s = 1.0 / jnp.sqrt(jnp.float32(hidden_dim))
    u = lambda k, shape: jax.random.uniform(
        k, shape, minval=-s, maxval=s, dtype=jnp.float32)
    return {
        "W_ih": u(ks[0], (3, embedding_dim, hidden_dim)),
        "W_hh": u(ks[1], (3, hidden_dim, hidden_dim)),
        "b_ih": u(ks[2], (3, 1, hidden_dim)),
        "b_hh": u(ks[3], (3, 1, hidden_dim)),
        "W_lin": u(ks[4], (hidden_dim, output_dim)),
        "b_lin": u(ks[5], (1, output_dim)),
    }


if __name__ == "__main__":
    B, E, H, O = 2, 16, 32, 8
    LENGTH = 8   # small stand-in for the module's length=100; semantics identical

    key = jax.random.PRNGKey(0)
    k_x, k_p = jax.random.split(key)
    x = jax.random.normal(k_x, (B, E), dtype=jnp.float32)
    params = init_params(k_p, E, H, O)

    out = jax.block_until_ready(decoder_forward(x, params, LENGTH))
    ref = jax.block_until_ready(decoder_reference(x, params, LENGTH))

    assert out.shape == (B, LENGTH, O), out.shape
    assert jnp.allclose(out, ref, atol=1e-4, rtol=1e-4), float(
        jnp.max(jnp.abs(out - ref)))

    print("KERNEL_OK")
</pallas_src>

<mosaic_0001>
module attributes {stable_mosaic.version = 11 : i64} {
  func.func @kernel(%arg0: memref<2x16xf32, #tpu.memory_space<vmem>>, %arg1: memref<104x128xf32, #tpu.memory_space<vmem>>, %arg2: memref<16x8xf32, #tpu.memory_space<vmem>>, %arg3: memref<16x32xf32, #tpu.memory_space<vmem>>) attributes {dimension_semantics = [], scalar_prefetch = 0 : i64, scratch_operands = 1 : i64, tpu.core_type = #tpu.core_type<tc>} {
    %c0 = arith.constant 0 : index
    %c0_0 = arith.constant 0 : index
    %0 = vector.load %arg0[%c0, %c0_0] : memref<2x16xf32, #tpu.memory_space<vmem>>, vector<2x16xf32>
    %c0_1 = arith.constant 0 : index
    %c0_2 = arith.constant 0 : index
    %1 = vector.load %arg1[%c0_1, %c0_2] : memref<104x128xf32, #tpu.memory_space<vmem>>, vector<16x96xf32>
    %c16 = arith.constant 16 : index
    %c0_3 = arith.constant 0 : index
    %2 = vector.load %arg1[%c16, %c0_3] : memref<104x128xf32, #tpu.memory_space<vmem>>, vector<32x96xf32>
    %c48 = arith.constant 48 : index
    %c0_4 = arith.constant 0 : index
    %3 = vector.load %arg1[%c48, %c0_4] : memref<104x128xf32, #tpu.memory_space<vmem>>, vector<1x96xf32>
    %c56 = arith.constant 56 : index
    %c0_5 = arith.constant 0 : index
    %4 = vector.load %arg1[%c56, %c0_5] : memref<104x128xf32, #tpu.memory_space<vmem>>, vector<1x32xf32>
    %c64 = arith.constant 64 : index
    %c0_6 = arith.constant 0 : index
    %5 = vector.load %arg1[%c64, %c0_6] : memref<104x128xf32, #tpu.memory_space<vmem>>, vector<32x8xf32>
    %c96 = arith.constant 96 : index
    %c0_7 = arith.constant 0 : index
    %6 = vector.load %arg1[%c96, %c0_7] : memref<104x128xf32, #tpu.memory_space<vmem>>, vector<1x8xf32>
    %cst = arith.constant dense<0.000000e+00> : vector<2x96xf32>
    %7 = tpu.matmul %0, %1, %cst {dimension_numbers = #tpu.dot_dimension_numbers<[1], [0], [0], [1], [0, 0, 1, 1], [], []>} : vector<2x16xf32>, vector<16x96xf32>, vector<2x96xf32> -> vector<2x96xf32>
    %8 = vector.broadcast %3 : vector<1x96xf32> to vector<2x96xf32>
    %9 = arith.addf %7, %8 : vector<2x96xf32>
    %10 = vector.extract_strided_slice %9 {offsets = [0, 0], sizes = [2, 32], strides = [1, 1]} : vector<2x96xf32> to vector<2x32xf32>
    %11 = vector.extract_strided_slice %9 {offsets = [0, 32], sizes = [2, 32], strides = [1, 1]} : vector<2x96xf32> to vector<2x32xf32>
    %12 = vector.extract_strided_slice %9 {offsets = [0, 64], sizes = [2, 32], strides = [1, 1]} : vector<2x96xf32> to vector<2x32xf32>
    %13 = arith.negf %10 : vector<2x32xf32>
    %14 = math.exp %13 : vector<2x32xf32>
    %cst_8 = arith.constant 1.000000e+00 : f32
    %15 = vector.broadcast %cst_8 : f32 to vector<2x32xf32>
    %16 = arith.addf %15, %14 : vector<2x32xf32>
    %17 = arith.divf %15, %16 : vector<2x32xf32>
    %18 = arith.negf %11 : vector<2x32xf32>
    %19 = math.exp %18 : vector<2x32xf32>
    %cst_9 = arith.constant 1.000000e+00 : f32
    %20 = vector.broadcast %cst_9 : f32 to vector<2x32xf32>
    %21 = arith.addf %20, %19 : vector<2x32xf32>
    %22 = arith.divf %20, %21 : vector<2x32xf32>
    %23 = vector.broadcast %4 : vector<1x32xf32> to vector<2x32xf32>
    %24 = arith.mulf %17, %23 : vector<2x32xf32>
    %25 = arith.addf %12, %24 : vector<2x32xf32>
    %26 = math.tanh %25 : vector<2x32xf32>
    %cst_10 = arith.constant 1.000000e+00 : f32
    %27 = vector.broadcast %cst_10 : f32 to vector<2x32xf32>
    %28 = arith.subf %27, %22 : vector<2x32xf32>
    %29 = arith.mulf %28, %26 : vector<2x32xf32>
    %c0_11 = arith.constant 0 : index
    %c0_12 = arith.constant 0 : index
    %30 = vector.load %arg3[%c0_11, %c0_12] : memref<16x32xf32, #tpu.memory_space<vmem>>, vector<2x32xf32>
    tpu.vector_store %arg3[%c0_11, %c0_12], %29 {strides = array<i32>} : memref<16x32xf32, #tpu.memory_space<vmem>>, vector<2x32xf32>,
    %cst_13 = arith.constant dense<0.000000e+00> : vector<2x96xf32>
    %31 = tpu.matmul %29, %2, %cst_13 {dimension_numbers = #tpu.dot_dimension_numbers<[1], [0], [0], [1], [0, 0, 1, 1], [], []>} : vector<2x32xf32>, vector<32x96xf32>, vector<2x96xf32> -> vector<2x96xf32>
    %32 = vector.extract_strided_slice %31 {offsets = [0, 0], sizes = [2, 32], strides = [1, 1]} : vector<2x96xf32> to vector<2x32xf32>
    %33 = arith.addf %10, %32 : vector<2x32xf32>
    %34 = arith.negf %33 : vector<2x32xf32>
    %35 = math.exp %34 : vector<2x32xf32>
    %cst_14 = arith.constant 1.000000e+00 : f32
    %36 = vector.broadcast %cst_14 : f32 to vector<2x32xf32>
    %37 = arith.addf %36, %35 : vector<2x32xf32>
    %38 = arith.divf %36, %37 : vector<2x32xf32>
    %39 = vector.extract_strided_slice %31 {offsets = [0, 32], sizes = [2, 32], strides = [1, 1]} : vector<2x96xf32> to vector<2x32xf32>
    %40 = arith.addf %11, %39 : vector<2x32xf32>
    %41 = arith.negf %40 : vector<2x32xf32>
    %42 = math.exp %41 : vector<2x32xf32>
    %cst_15 = arith.constant 1.000000e+00 : f32
    %43 = vector.broadcast %cst_15 : f32 to vector<2x32xf32>
    %44 = arith.addf %43, %42 : vector<2x32xf32>
    %45 = arith.divf %43, %44 : vector<2x32xf32>
    %46 = vector.extract_strided_slice %31 {offsets = [0, 64], sizes = [2, 32], strides = [1, 1]} : vector<2x96xf32> to vector<2x32xf32>
    %47 = vector.broadcast %4 : vector<1x32xf32> to vector<2x32xf32>
    %48 = arith.addf %46, %47 : vector<2x32xf32>
    %49 = arith.mulf %38, %48 : vector<2x32xf32>
    %50 = arith.addf %12, %49 : vector<2x32xf32>
    %51 = math.tanh %50 : vector<2x32xf32>
    %cst_16 = arith.constant 1.000000e+00 : f32
    %52 = vector.broadcast %cst_16 : f32 to vector<2x32xf32>
    %53 = arith.subf %52, %45 : vector<2x32xf32>
    %54 = arith.mulf %53, %51 : vector<2x32xf32>
    %55 = arith.mulf %45, %29 : vector<2x32xf32>
    %56 = arith.addf %54, %55 : vector<2x32xf32>
    %c2 = arith.constant 2 : index
    %c0_17 = arith.constant 0 : index
    %57 = vector.load %arg3[%c2, %c0_17] : memref<16x32xf32, #tpu.memory_space<vmem>>, vector<2x32xf32>
    tpu.vector_store %arg3[%c2, %c0_17], %56 {strides = array<i32>} : memref<16x32xf32, #tpu.memory_space<vmem>>, vector<2x32xf32>,
    %cst_18 = arith.constant dense<0.000000e+00> : vector<2x96xf32>
    %58 = tpu.matmul %56, %2, %cst_18 {dimension_numbers = #tpu.dot_dimension_numbers<[1], [0], [0], [1], [0, 0, 1, 1], [], []>} : vector<2x32xf32>, vector<32x96xf32>, vector<2x96xf32> -> vector<2x96xf32>
    %59 = vector.extract_strided_slice %58 {offsets = [0, 0], sizes = [2, 32], strides = [1, 1]} : vector<2x96xf32> to vector<2x32xf32>
    %60 = arith.addf %10, %59 : vector<2x32xf32>
    %61 = arith.negf %60 : vector<2x32xf32>
    %62 = math.exp %61 : vector<2x32xf32>
    %cst_19 = arith.constant 1.000000e+00 : f32
    %63 = vector.broadcast %cst_19 : f32 to vector<2x32xf32>
    %64 = arith.addf %63, %62 : vector<2x32xf32>
    %65 = arith.divf %63, %64 : vector<2x32xf32>
    %66 = vector.extract_strided_slice %58 {offsets = [0, 32], sizes = [2, 32], strides = [1, 1]} : vector<2x96xf32> to vector<2x32xf32>
    %67 = arith.addf %11, %66 : vector<2x32xf32>
    %68 = arith.negf %67 : vector<2x32xf32>
    %69 = math.exp %68 : vector<2x32xf32>
    %cst_20 = arith.constant 1.000000e+00 : f32
    %70 = vector.broadcast %cst_20 : f32 to vector<2x32xf32>
    %71 = arith.addf %70, %69 : vector<2x32xf32>
    %72 = arith.divf %70, %71 : vector<2x32xf32>
    %73 = vector.extract_strided_slice %58 {offsets = [0, 64], sizes = [2, 32], strides = [1, 1]} : vector<2x96xf32> to vector<2x32xf32>
    %74 = vector.broadcast %4 : vector<1x32xf32> to vector<2x32xf32>
    %75 = arith.addf %73, %74 : vector<2x32xf32>
    %76 = arith.mulf %65, %75 : vector<2x32xf32>
    %77 = arith.addf %12, %76 : vector<2x32xf32>
    %78 = math.tanh %77 : vector<2x32xf32>
    %cst_21 = arith.constant 1.000000e+00 : f32
    %79 = vector.broadcast %cst_21 : f32 to vector<2x32xf32>
    %80 = arith.subf %79, %72 : vector<2x32xf32>
    %81 = arith.mulf %80, %78 : vector<2x32xf32>
    %82 = arith.mulf %72, %56 : vector<2x32xf32>
    %83 = arith.addf %81, %82 : vector<2x32xf32>
    %c4 = arith.constant 4 : index
    %c0_22 = arith.constant 0 : index
    %84 = vector.load %arg3[%c4, %c0_22] : memref<16x32xf32, #tpu.memory_space<vmem>>, vector<2x32xf32>
    tpu.vector_store %arg3[%c4, %c0_22], %83 {strides = array<i32>} : memref<16x32xf32, #tpu.memory_space<vmem>>, vector<2x32xf32>,
    %cst_23 = arith.constant dense<0.000000e+00> : vector<2x96xf32>
    %85 = tpu.matmul %83, %2, %cst_23 {dimension_numbers = #tpu.dot_dimension_numbers<[1], [0], [0], [1], [0, 0, 1, 1], [], []>} : vector<2x32xf32>, vector<32x96xf32>, vector<2x96xf32> -> vector<2x96xf32>
    %86 = vector.extract_strided_slice %85 {offsets = [0, 0], sizes = [2, 32], strides = [1, 1]} : vector<2x96xf32> to vector<2x32xf32>
    %87 = arith.addf %10, %86 : vector<2x32xf32>
    %88 = arith.negf %87 : vector<2x32xf32>
    %89 = math.exp %88 : vector<2x32xf32>
    %cst_24 = arith.constant 1.000000e+00 : f32
    %90 = vector.broadcast %cst_24 : f32 to vector<2x32xf32>
    %91 = arith.addf %90, %89 : vector<2x32xf32>
    %92 = arith.divf %90, %91 : vector<2x32xf32>
    %93 = vector.extract_strided_slice %85 {offsets = [0, 32], sizes = [2, 32], strides = [1, 1]} : vector<2x96xf32> to vector<2x32xf32>
    %94 = arith.addf %11, %93 : vector<2x32xf32>
    %95 = arith.negf %94 : vector<2x32xf32>
    %96 = math.exp %95 : vector<2x32xf32>
    %cst_25 = arith.constant 1.000000e+00 : f32
    %97 = vector.broadcast %cst_25 : f32 to vector<2x32xf32>
    %98 = arith.addf %97, %96 : vector<2x32xf32>
    %99 = arith.divf %97, %98 : vector<2x32xf32>
    %100 = vector.extract_strided_slice %85 {offsets = [0, 64], sizes = [2, 32], strides = [1, 1]} : vector<2x96xf32> to vector<2x32xf32>
    %101 = vector.broadcast %4 : vector<1x32xf32> to vector<2x32xf32>
    %102 = arith.addf %100, %101 : vector<2x32xf32>
    %103 = arith.mulf %92, %102 : vector<2x32xf32>
    %104 = arith.addf %12, %103 : vector<2x32xf32>
    %105 = math.tanh %104 : vector<2x32xf32>
    %cst_26 = arith.constant 1.000000e+00 : f32
    %106 = vector.broadcast %cst_26 : f32 to vector<2x32xf32>
    %107 = arith.subf %106, %99 : vector<2x32xf32>
    %108 = arith.mulf %107, %105 : vector<2x32xf32>
    %109 = arith.mulf %99, %83 : vector<2x32xf32>
    %110 = arith.addf %108, %109 : vector<2x32xf32>
    %c6 = arith.constant 6 : index
    %c0_27 = arith.constant 0 : index
    %111 = vector.load %arg3[%c6, %c0_27] : memref<16x32xf32, #tpu.memory_space<vmem>>, vector<2x32xf32>
    tpu.vector_store %arg3[%c6, %c0_27], %110 {strides = array<i32>} : memref<16x32xf32, #tpu.memory_space<vmem>>, vector<2x32xf32>,
    %cst_28 = arith.constant dense<0.000000e+00> : vector<2x96xf32>
    %112 = tpu.matmul %110, %2, %cst_28 {dimension_numbers = #tpu.dot_dimension_numbers<[1], [0], [0], [1], [0, 0, 1, 1], [], []>} : vector<2x32xf32>, vector<32x96xf32>, vector<2x96xf32> -> vector<2x96xf32>
    %113 = vector.extract_strided_slice %112 {offsets = [0, 0], sizes = [2, 32], strides = [1, 1]} : vector<2x96xf32> to vector<2x32xf32>
    %114 = arith.addf %10, %113 : vector<2x32xf32>
    %115 = arith.negf %114 : vector<2x32xf32>
    %116 = math.exp %115 : vector<2x32xf32>
    %cst_29 = arith.constant 1.000000e+00 : f32
    %117 = vector.broadcast %cst_29 : f32 to vector<2x32xf32>
    %118 = arith.addf %117, %116 : vector<2x32xf32>
    %119 = arith.divf %117, %118 : vector<2x32xf32>
    %120 = vector.extract_strided_slice %112 {offsets = [0, 32], sizes = [2, 32], strides = [1, 1]} : vector<2x96xf32> to vector<2x32xf32>
    %121 = arith.addf %11, %120 : vector<2x32xf32>
    %122 = arith.negf %121 : vector<2x32xf32>
    %123 = math.exp %122 : vector<2x32xf32>
    %cst_30 = arith.constant 1.000000e+00 : f32
    %124 = vector.broadcast %cst_30 : f32 to vector<2x32xf32>
    %125 = arith.addf %124, %123 : vector<2x32xf32>
    %126 = arith.divf %124, %125 : vector<2x32xf32>
    %127 = vector.extract_strided_slice %112 {offsets = [0, 64], sizes = [2, 32], strides = [1, 1]} : vector<2x96xf32> to vector<2x32xf32>
    %128 = vector.broadcast %4 : vector<1x32xf32> to vector<2x32xf32>
    %129 = arith.addf %127, %128 : vector<2x32xf32>
    %130 = arith.mulf %119, %129 : vector<2x32xf32>
    %131 = arith.addf %12, %130 : vector<2x32xf32>
    %132 = math.tanh %131 : vector<2x32xf32>
    %cst_31 = arith.constant 1.000000e+00 : f32
    %133 = vector.broadcast %cst_31 : f32 to vector<2x32xf32>
    %134 = arith.subf %133, %126 : vector<2x32xf32>
    %135 = arith.mulf %134, %132 : vector<2x32xf32>
    %136 = arith.mulf %126, %110 : vector<2x32xf32>
    %137 = arith.addf %135, %136 : vector<2x32xf32>
    %c8 = arith.constant 8 : index
    %c0_32 = arith.constant 0 : index
    %138 = vector.load %arg3[%c8, %c0_32] : memref<16x32xf32, #tpu.memory_space<vmem>>, vector<2x32xf32>
    tpu.vector_store %arg3[%c8, %c0_32], %137 {strides = array<i32>} : memref<16x32xf32, #tpu.memory_space<vmem>>, vector<2x32xf32>,
    %cst_33 = arith.constant dense<0.000000e+00> : vector<2x96xf32>
    %139 = tpu.matmul %137, %2, %cst_33 {dimension_numbers = #tpu.dot_dimension_numbers<[1], [0], [0], [1], [0, 0, 1, 1], [], []>} : vector<2x32xf32>, vector<32x96xf32>, vector<2x96xf32> -> vector<2x96xf32>
    %140 = vector.extract_strided_slice %139 {offsets = [0, 0], sizes = [2, 32], strides = [1, 1]} : vector<2x96xf32> to vector<2x32xf32>
    %141 = arith.addf %10, %140 : vector<2x32xf32>
    %142 = arith.negf %141 : vector<2x32xf32>
    %143 = math.exp %142 : vector<2x32xf32>
    %cst_34 = arith.constant 1.000000e+00 : f32
    %144 = vector.broadcast %cst_34 : f32 to vector<2x32xf32>
    %145 = arith.addf %144, %143 : vector<2x32xf32>
    %146 = arith.divf %144, %145 : vector<2x32xf32>
    %147 = vector.extract_strided_slice %139 {offsets = [0, 32], sizes = [2, 32], strides = [1, 1]} : vector<2x96xf32> to vector<2x32xf32>
    %148 = arith.addf %11, %147 : vector<2x32xf32>
    %149 = arith.negf %148 : vector<2x32xf32>
    %150 = math.exp %149 : vector<2x32xf32>
    %cst_35 = arith.constant 1.000000e+00 : f32
    %151 = vector.broadcast %cst_35 : f32 to vector<2x32xf32>
    %152 = arith.addf %151, %150 : vector<2x32xf32>
    %153 = arith.divf %151, %152 : vector<2x32xf32>
    %154 = vector.extract_strided_slice %139 {offsets = [0, 64], sizes = [2, 32], strides = [1, 1]} : vector<2x96xf32> to vector<2x32xf32>
    %155 = vector.broadcast %4 : vector<1x32xf32> to vector<2x32xf32>
    %156 = arith.addf %154, %155 : vector<2x32xf32>
    %157 = arith.mulf %146, %156 : vector<2x32xf32>
    %158 = arith.addf %12, %157 : vector<2x32xf32>
    %159 = math.tanh %158 : vector<2x32xf32>
    %cst_36 = arith.constant 1.000000e+00 : f32
    %160 = vector.broadcast %cst_36 : f32 to vector<2x32xf32>
    %161 = arith.subf %160, %153 : vector<2x32xf32>
    %162 = arith.mulf %161, %159 : vector<2x32xf32>
    %163 = arith.mulf %153, %137 : vector<2x32xf32>
    %164 = arith.addf %162, %163 : vector<2x32xf32>
    %c10 = arith.constant 10 : index
    %c0_37 = arith.constant 0 : index
    %165 = vector.load %arg3[%c10, %c0_37] : memref<16x32xf32, #tpu.memory_space<vmem>>, vector<2x32xf32>
    tpu.vector_store %arg3[%c10, %c0_37], %164 {strides = array<i32>} : memref<16x32xf32, #tpu.memory_space<vmem>>, vector<2x32xf32>,
    %cst_38 = arith.constant dense<0.000000e+00> : vector<2x96xf32>
    %166 = tpu.matmul %164, %2, %cst_38 {dimension_numbers = #tpu.dot_dimension_numbers<[1], [0], [0], [1], [0, 0, 1, 1], [], []>} : vector<2x32xf32>, vector<32x96xf32>, vector<2x96xf32> -> vector<2x96xf32>
    %167 = vector.extract_strided_slice %166 {offsets = [0, 0], sizes = [2, 32], strides = [1, 1]} : vector<2x96xf32> to vector<2x32xf32>
    %168 = arith.addf %10, %167 : vector<2x32xf32>
    %169 = arith.negf %168 : vector<2x32xf32>
    %170 = math.exp %169 : vector<2x32xf32>
    %cst_39 = arith.constant 1.000000e+00 : f32
    %171 = vector.broadcast %cst_39 : f32 to vector<2x32xf32>
    %172 = arith.addf %171, %170 : vector<2x32xf32>
    %173 = arith.divf %171, %172 : vector<2x32xf32>
    %174 = vector.extract_strided_slice %166 {offsets = [0, 32], sizes = [2, 32], strides = [1, 1]} : vector<2x96xf32> to vector<2x32xf32>
    %175 = arith.addf %11, %174 : vector<2x32xf32>
    %176 = arith.negf %175 : vector<2x32xf32>
    %177 = math.exp %176 : vector<2x32xf32>
    %cst_40 = arith.constant 1.000000e+00 : f32
    %178 = vector.broadcast %cst_40 : f32 to vector<2x32xf32>
    %179 = arith.addf %178, %177 : vector<2x32xf32>
    %180 = arith.divf %178, %179 : vector<2x32xf32>
    %181 = vector.extract_strided_slice %166 {offsets = [0, 64], sizes = [2, 32], strides = [1, 1]} : vector<2x96xf32> to vector<2x32xf32>
    %182 = vector.broadcast %4 : vector<1x32xf32> to vector<2x32xf32>
    %183 = arith.addf %181, %182 : vector<2x32xf32>
    %184 = arith.mulf %173, %183 : vector<2x32xf32>
    %185 = arith.addf %12, %184 : vector<2x32xf32>
    %186 = math.tanh %185 : vector<2x32xf32>
    %cst_41 = arith.constant 1.000000e+00 : f32
    %187 = vector.broadcast %cst_41 : f32 to vector<2x32xf32>
    %188 = arith.subf %187, %180 : vector<2x32xf32>
    %189 = arith.mulf %188, %186 : vector<2x32xf32>
    %190 = arith.mulf %180, %164 : vector<2x32xf32>
    %191 = arith.addf %189, %190 : vector<2x32xf32>
    %c12 = arith.constant 12 : index
    %c0_42 = arith.constant 0 : index
    %192 = vector.load %arg3[%c12, %c0_42] : memref<16x32xf32, #tpu.memory_space<vmem>>, vector<2x32xf32>
    tpu.vector_store %arg3[%c12, %c0_42], %191 {strides = array<i32>} : memref<16x32xf32, #tpu.memory_space<vmem>>, vector<2x32xf32>,
    %cst_43 = arith.constant dense<0.000000e+00> : vector<2x96xf32>
    %193 = tpu.matmul %191, %2, %cst_43 {dimension_numbers = #tpu.dot_dimension_numbers<[1], [0], [0], [1], [0, 0, 1, 1], [], []>} : vector<2x32xf32>, vector<32x96xf32>, vector<2x96xf32> -> vector<2x96xf32>
    %194 = vector.extract_strided_slice %193 {offsets = [0, 0], sizes = [2, 32], strides = [1, 1]} : vector<2x96xf32> to vector<2x32xf32>
    %195 = arith.addf %10, %194 : vector<2x32xf32>
    %196 = arith.negf %195 : vector<2x32xf32>
    %197 = math.exp %196 : vector<2x32xf32>
    %cst_44 = arith.constant 1.000000e+00 : f32
    %198 = vector.broadcast %cst_44 : f32 to vector<2x32xf32>
    %199 = arith.addf %198, %197 : vector<2x32xf32>
    %200 = arith.divf %198, %199 : vector<2x32xf32>
    %201 = vector.extract_strided_slice %193 {offsets = [0, 32], sizes = [2, 32], strides = [1, 1]} : vector<2x96xf32> to vector<2x32xf32>
    %202 = arith.addf %11, %201 : vector<2x32xf32>
    %203 = arith.negf %202 : vector<2x32xf32>
    %204 = math.exp %203 : vector<2x32xf32>
    %cst_45 = arith.constant 1.000000e+00 : f32
    %205 = vector.broadcast %cst_45 : f32 to vector<2x32xf32>
    %206 = arith.addf %205, %204 : vector<2x32xf32>
    %207 = arith.divf %205, %206 : vector<2x32xf32>
    %208 = vector.extract_strided_slice %193 {offsets = [0, 64], sizes = [2, 32], strides = [1, 1]} : vector<2x96xf32> to vector<2x32xf32>
    %209 = vector.broadcast %4 : vector<1x32xf32> to vector<2x32xf32>
    %210 = arith.addf %208, %209 : vector<2x32xf32>
    %211 = arith.mulf %200, %210 : vector<2x32xf32>
    %212 = arith.addf %12, %211 : vector<2x32xf32>
    %213 = math.tanh %212 : vector<2x32xf32>
    %cst_46 = arith.constant 1.000000e+00 : f32
    %214 = vector.broadcast %cst_46 : f32 to vector<2x32xf32>
    %215 = arith.subf %214, %207 : vector<2x32xf32>
    %216 = arith.mulf %215, %213 : vector<2x32xf32>
    %217 = arith.mulf %207, %191 : vector<2x32xf32>
    %218 = arith.addf %216, %217 : vector<2x32xf32>
    %c14 = arith.constant 14 : index
    %c0_47 = arith.constant 0 : index
    %219 = vector.load %arg3[%c14, %c0_47] : memref<16x32xf32, #tpu.memory_space<vmem>>, vector<2x32xf32>
    tpu.vector_store %arg3[%c14, %c0_47], %218 {strides = array<i32>} : memref<16x32xf32, #tpu.memory_space<vmem>>, vector<2x32xf32>,
    %c0_48 = arith.constant 0 : index
    %c0_49 = arith.constant 0 : index
    %220 = vector.load %arg3[%c0_48, %c0_49] : memref<16x32xf32, #tpu.memory_space<vmem>>, vector<16x32xf32>
    %cst_50 = arith.constant dense<0.000000e+00> : vector<16x8xf32>
    %221 = tpu.matmul %220, %5, %cst_50 {dimension_numbers = #tpu.dot_dimension_numbers<[1], [0], [0], [1], [0, 0, 1, 1], [], []>} : vector<16x32xf32>, vector<32x8xf32>, vector<16x8xf32> -> vector<16x8xf32>
    %222 = vector.broadcast %6 : vector<1x8xf32> to vector<16x8xf32>
    %223 = arith.addf %221, %222 : vector<16x8xf32>
    %c0_51 = arith.constant 0 : index
    %c0_52 = arith.constant 0 : index
    %224 = vector.load %arg2[%c0_51, %c0_52] : memref<16x8xf32, #tpu.memory_space<vmem>>, vector<16x8xf32>
    tpu.vector_store %arg2[%c0_51, %c0_52], %223 {strides = array<i32>} : memref<16x8xf32, #tpu.memory_space<vmem>>, vector<16x8xf32>,
    return
  }
}

</mosaic_0001>

<bundles_post_ra>
// kernel: decoder_forward.1
= control target key start
LH: loop header
LB: loop body
LE: loop exit
PB: predicated region body
PF: predicated region fallthrough
CT: control target
= control target key end

     0   :  { %vm26_vm0 = vcmask 130048   ;;  %s673_s18 = smov 64   ;;  %s674_s19 = smov 96   ;;  %vm87_vm5 = vcmask 254976   ;;  %vm89_vm6 = vcmask 261120   ;;  %s820_s1 = inlined_call_operand.vmem [shape: f32[104,128], index: 1, kind: input, shape index: {}]   ;;  %s821_s0 = inlined_call_operand.vmem [shape: f32[2,16], index: 0, kind: input, shape index: {}]   ;;  %s822_s2 = inlined_call_operand.vmem [shape: f32[16,8], index: 2, kind: output, shape index: {}]  }
   0x1   :  { %v13_v0 = vld [vmem:[%s820_s1 + $0x8] sm:$0xff]  ;;  %v12_v1 = vld [vmem:[%s820_s1] sm:$0xff]  ;;  %v622_v3 = vld [vmem:[%s820_s1 + $0x30] ss:$0 sm:$0xff] }
   0x2   :  { %44 = vmatpush.msra.mxu1 %v13_v0  ;;  %v11_v2 = vld [vmem:[%s821_s0] sm:$0x3]  ;;  %v623_v16 = vld [vmem:[%s820_s1 + $0x38] ss:$0 sm:$0xff]  ;;  %v17_v24 = vld [vmem:[%s820_s1 + $0x28] sm:$0xff] }
   0x3   :  { %v16_v25 = vld [vmem:[%s820_s1 + $0x20] sm:$0xff]  ;;  %175 = vmatpush.msra.mxu2 %v17_v24  ;;  %v15_v26 = vld [vmem:[%s820_s1 + $0x18] sm:$0xff]  ;;  %242 = vmatpush.msra.mxu3 %v17_v24  ;;  %v14_v27 = vld [vmem:[%s820_s1 + $0x10] sm:$0xff] }
   0x4   :  { %45 = vmatpush.msra.mxu1 %v12_v1  ;;  %309 = vmatpush.msra.mxu0 %v17_v24 }
   0x5   :  { %602 = vmatmul.msk.f32.vlgmr.msra.gmra.mxu1 %vm26_vm0, %v11_v2  ;;  %176 = vmatpush.msra.mxu2 %v16_v25 }
   0x6   :  { %104 = vmatpush.msrb.mxu1 %v17_v24  ;;  %243 = vmatpush.msra.mxu3 %v16_v25 }
   0x7   :  { %310 = vmatpush.msra.mxu0 %v16_v25  ;;  %177 = vmatpush.msra.mxu2 %v15_v26 }
   0x8   :  { %105 = vmatpush.msrb.mxu1 %v16_v25  ;;  %244 = vmatpush.msra.mxu3 %v15_v26 }
   0x9   :  { %311 = vmatpush.msra.mxu0 %v15_v26  ;;  %178 = vmatpush.msra.mxu2 %v14_v27 }
   0xa   :  { %106 = vmatpush.msrb.mxu1 %v15_v26  ;;  %245 = vmatpush.msra.mxu3 %v14_v27 }
   0xb   :  { %312 = vmatpush.msra.mxu0 %v14_v27  ;;  %443 = vmatpush.msrb.mxu2 %v17_v24 }
   0xc   :  { %107 = vmatpush.msrb.mxu1 %v14_v27  ;;  %510 = vmatpush.msrb.mxu3 %v17_v24 }
   0xd   :  { %444 = vmatpush.msrb.mxu2 %v16_v25 }
   0xe   :  { %376 = vmatpush.msra.mxu1 %v17_v24  ;;  %511 = vmatpush.msrb.mxu3 %v16_v25 }
   0xf   :  { %445 = vmatpush.msrb.mxu2 %v15_v26 }
  0x10   :  { %377 = vmatpush.msra.mxu1 %v16_v25  ;;  %512 = vmatpush.msrb.mxu3 %v15_v26 }
  0x11   :  { %446 = vmatpush.msrb.mxu2 %v14_v27 }
  0x12   :  { %378 = vmatpush.msra.mxu1 %v15_v26  ;;  %513 = vmatpush.msrb.mxu3 %v14_v27 }
  0x14   :  { %379 = vmatpush.msra.mxu1 %v14_v27 }
  0x82   :  { %v47_v4 = vpop.f32.mrf.mxu1 }
  0x83   :  { %v702_v5 = vadd.f32 %v622_v3, %v47_v4 }
  0x85   :  { %v603_v6 = vmul.f32 -1.442695, %v702_v5 }
  0x87   :  { %625 = vpow2.f32 %v603_v6 }
  0x8d   :  { %v626_v7 = vpop.eup %625 }
  0x8e   :  { %v53_v8 = vadd.f32 1.0, %v626_v7 }
  0x90   :  { %627 = vrcp.f32 %v53_v8  ;;  %v65_v12 = vand.u32 2147483648, %v53_v8  ;;  %v63_v14 = vand.u32 2147483647, %v53_v8  ;;  %vm59_vm2 = vweird.f32 %v53_v8 }
  0x92   :  { %v66_v17 = vor.u32 1.1754944e-38, %v65_v12  ;;  %vm64_vm4 = vcmp.eq.f32.partialorder %v63_v14, 8.507059e+37 }
  0x96   :  { %v628_v9 = vpop.eup %627 }
  0x97   :  { %v55_v10 = vmul.f32 %v628_v9, %v53_v8  ;;  %vm60_vm1 = vweird.f32 %v628_v9 }
  0x98   :  { %vm61_vm3 = vmor %vm59_vm2, %vm60_vm1 }
  0x99   :  { %v56_v11 = vsub.f32 1.0, %v55_v10 }
  0x9b   :  { %v57_v13 = vmul.f32 %v628_v9, %v56_v11 }
  0x9d   :  { %v58_v15 = vadd.f32 %v628_v9, %v57_v13 }
  0x9f   :  { %v62_v18 = vsel %vm61_vm3, %v628_v9, %v58_v15  ;;  %vm595_vm3 = vcmask 64512  }
  0xa0   :  { %v67_v19 = vsel %vm64_vm4, %v66_v17, %v62_v18 }
  0xa1   :  { %v70_v20 = vmul.f32 %v623_v16, %v67_v19  ;;  %v77_v28 = vsub.f32 1.0, %v67_v19 }
  0xa3   :  { %72 = vrot.lane.b32.xlu0 %v70_v20, %s673_s18 }
 0x115   :  { %v73_v21 = vpop.permute.xlu0 %72 }
 0x116   :  { %v75_v22 = vadd.f32 %v73_v21, %v702_v5 }
 0x118   :  { %629 = vtanh.f32 %v75_v22 }
 0x11e   :  { %v630_v23 = vpop.eup %629 }
 0x11f   :  { %79 = vrot.lane.b32.xlu0 %v630_v23, %s674_s19 }
 0x191   :  { %v80_v29 = vpop.permute.xlu0 %79 }
 0x192   :  { %v82_v30 = vmul.f32 %v80_v29, %v77_v28 }
 0x194   :  { %84 = vrot.lane.b32.xlu1 %v82_v30, %s674_s19 }
 0x19c   :  { %133 = vrot.lane.b32.xlu1 %v623_v16, %s673_s18 }
 0x206   :  { %v85_v31 = vpop.permute.xlu1 %84 }
 0x207   :  { %88 = vst.msk [vmem:[#allocation2] sm:$0x3] %vm87_vm5, %v85_v31  ;;  %604 = vmatmul.msk.f32.vlgmr.msrb.gmra.mxu1 %vm89_vm6, %v85_v31 }
 0x20e   :  { %v727_v32 = vpop.permute.xlu1 %133 }
 0x284   :  { %v109_v33 = vpop.f32.mrf.mxu1 }
 0x285   :  { %v136_v34 = vadd.f32 %v727_v32, %v109_v33  ;;  %v112_v35 = vadd.f32 %v109_v33, %v702_v5 }
 0x287   :  { %138 = vrot.lane.b32.xlu2 %v136_v34, %s673_s18  ;;  %v605_v36 = vmul.f32 -1.442695, %v112_v35 }
 0x289   :  { %631 = vpow2.f32 %v605_v36 }
 0x28f   :  { %v632_v37 = vpop.eup %631 }
 0x290   :  { %v116_v38 = vadd.f32 1.0, %v632_v37 }
 0x292   :  { %633 = vrcp.f32 %v116_v38  ;;  %v128_v44 = vand.u32 2147483648, %v116_v38  ;;  %vm122_vm8 = vweird.f32 %v116_v38  ;;  %v126_v45 = vand.u32 2147483647, %v116_v38 }
 0x294   :  { %v129_v47 = vor.u32 1.1754944e-38, %v128_v44  ;;  %vm127_vm10 = vcmp.eq.f32.partialorder %v126_v45, 8.507059e+37 }
 0x298   :  { %v634_v39 = vpop.eup %633 }
 0x299   :  { %v118_v40 = vmul.f32 %v634_v39, %v116_v38  ;;  %vm123_vm7 = vweird.f32 %v634_v39 }
 0x29a   :  { %vm124_vm9 = vmor %vm122_vm8, %vm123_vm7 }
 0x29b   :  { %v119_v41 = vsub.f32 1.0, %v118_v40 }
 0x29d   :  { %v120_v42 = vmul.f32 %v634_v39, %v119_v41 }
 0x29f   :  { %v121_v43 = vadd.f32 %v634_v39, %v120_v42 }
 0x2a1   :  { %v125_v46 = vsel %vm124_vm9, %v634_v39, %v121_v43 }
 0x2a2   :  { %v130_v48 = vsel %vm127_vm10, %v129_v47, %v125_v46 }
 0x2a3   :  { %v148_v54 = vsub.f32 1.0, %v130_v48  ;;  %v154_v56 = vmul.f32 %v130_v48, %v82_v30 }
 0x2e1   :  { %v139_v49 = vpop.permute.xlu2 %138 }
 0x2e2   :  { %v141_v50 = vmul.f32 %v139_v49, %v130_v48 }
 0x2e4   :  { %143 = vrot.lane.b32.xlu2 %v141_v50, %s673_s18 }
 0x33e   :  { %v144_v51 = vpop.permute.xlu2 %143 }
 0x33f   :  { %v146_v52 = vadd.f32 %v144_v51, %v702_v5  ;;  %v23_v51 = vld [vmem:[%s820_s1 + $0x58] sm:$0xff] }
 0x340   :  { %584 = vmatpush.msrb.mxu0 %v23_v51 }
 0x341   :  { %635 = vtanh.f32 %v146_v52  ;;  %v22_v52 = vld [vmem:[%s820_s1 + $0x50] sm:$0xff] }
 0x342   :  { %585 = vmatpush.msrb.mxu0 %v22_v52 }
 0x347   :  { %v636_v53 = vpop.eup %635 }
 0x348   :  { %150 = vrot.lane.b32.xlu0 %v636_v53, %s674_s19  ;;  %v21_v53 = vld [vmem:[%s820_s1 + $0x48] sm:$0xff] }
 0x349   :  { %586 = vmatpush.msrb.mxu0 %v21_v53 }
 0x3ba   :  { %v151_v55 = vpop.permute.xlu0 %150 }
 0x3bb   :  { %v153_v57 = vmul.f32 %v151_v55, %v148_v54  ;;  %v20_v54 = vld [vmem:[%s820_s1 + $0x40] sm:$0xff] }
 0x3bc   :  { %587 = vmatpush.msrb.mxu0 %v20_v54 }
 0x3bd   :  { %v155_v58 = vadd.f32 %v154_v56, %v153_v57 }
 0x3bf   :  { %157 = vrot.lane.b32.xlu1 %v155_v58, %s674_s19 }
 0x431   :  { %v158_v59 = vpop.permute.xlu1 %157 }
 0x432   :  { %160 = vst.msk [vmem:[#allocation2 + $0x2] sm:$0x3] %vm87_vm5, %v158_v59  ;;  %606 = vmatmul.msk.f32.vlgmr.msra.gmra.mxu2 %vm89_vm6, %v158_v59  ;;  %v774_v59 = vld [vmem:[%s820_s1 + $0x60] ss:$0 sm:$0xff] }
 0x4b5   :  { %v180_v60 = vpop.f32.mrf.mxu2 }
 0x4b6   :  { %v203_v61 = vadd.f32 %v180_v60, %v727_v32  ;;  %v183_v62 = vadd.f32 %v180_v60, %v702_v5 }
 0x4b8   :  { %205 = vrot.lane.b32.xlu2 %v203_v61, %s673_s18  ;;  %v607_v63 = vmul.f32 -1.442695, %v183_v62 }
 0x4ba   :  { %637 = vpow2.f32 %v607_v63 }
 0x4c0   :  { %v638_v0 = vpop.eup %637 }
 0x4c1   :  { %v187_v1 = vadd.f32 1.0, %v638_v0 }
 0x4c3   :  { %639 = vrcp.f32 %v187_v1  ;;  %v199_v8 = vand.u32 2147483648, %v187_v1  ;;  %vm193_vm12 = vweird.f32 %v187_v1  ;;  %v197_v9 = vand.u32 2147483647, %v187_v1 }
 0x4c5   :  { %v200_v11 = vor.u32 1.1754944e-38, %v199_v8  ;;  %vm198_vm14 = vcmp.eq.f32.partialorder %v197_v9, 8.507059e+37 }
 0x4c9   :  { %v640_v2 = vpop.eup %639 }
 0x4ca   :  { %v189_v3 = vmul.f32 %v640_v2, %v187_v1  ;;  %vm194_vm11 = vweird.f32 %v640_v2 }
 0x4cb   :  { %vm195_vm13 = vmor %vm193_vm12, %vm194_vm11 }
 0x4cc   :  { %v190_v4 = vsub.f32 1.0, %v189_v3 }
 0x4ce   :  { %v191_v6 = vmul.f32 %v640_v2, %v190_v4 }
 0x4d0   :  { %v192_v7 = vadd.f32 %v640_v2, %v191_v6 }
 0x4d2   :  { %v196_v10 = vsel %vm195_vm13, %v640_v2, %v192_v7 }
 0x4d3   :  { %v201_v13 = vsel %vm198_vm14, %v200_v11, %v196_v10 }
 0x4d4   :  { %v215_v18 = vsub.f32 1.0, %v201_v13  ;;  %v221_v20 = vmul.f32 %v201_v13, %v155_v58 }
 0x512   :  { %v206_v12 = vpop.permute.xlu2 %205 }
 0x513   :  { %v208_v14 = vmul.f32 %v206_v12, %v201_v13 }
 0x515   :  { %210 = vrot.lane.b32.xlu0 %v208_v14, %s673_s18 }
 0x587   :  { %v211_v15 = vpop.permute.xlu0 %210 }
 0x588   :  { %v213_v16 = vadd.f32 %v211_v15, %v702_v5 }
 0x58a   :  { %641 = vtanh.f32 %v213_v16 }
 0x590   :  { %v642_v17 = vpop.eup %641 }
 0x591   :  { %217 = vrot.lane.b32.xlu1 %v642_v17, %s674_s19 }
 0x603   :  { %v218_v19 = vpop.permute.xlu1 %217 }
 0x604   :  { %v220_v21 = vmul.f32 %v218_v19, %v215_v18 }
 0x606   :  { %v222_v22 = vadd.f32 %v221_v20, %v220_v21 }
 0x608   :  { %224 = vrot.lane.b32.xlu2 %v222_v22, %s674_s19 }
 0x662   :  { %v225_v23 = vpop.permute.xlu2 %224 }
 0x663   :  { %227 = vst.msk [vmem:[#allocation2 + $0x4] sm:$0x3] %vm87_vm5, %v225_v23  ;;  %608 = vmatmul.msk.f32.vlgmr.msra.gmra.mxu3 %vm89_vm6, %v225_v23 }
 0x6e6   :  { %v247_v24 = vpop.f32.mrf.mxu3 }
 0x6e7   :  { %v270_v25 = vadd.f32 %v247_v24, %v727_v32  ;;  %v250_v26 = vadd.f32 %v247_v24, %v702_v5 }
 0x6e9   :  { %272 = vrot.lane.b32.xlu0 %v270_v25, %s673_s18  ;;  %v609_v27 = vmul.f32 -1.442695, %v250_v26 }
 0x6eb   :  { %643 = vpow2.f32 %v609_v27 }
 0x6f1   :  { %v644_v28 = vpop.eup %643 }
 0x6f2   :  { %v254_v29 = vadd.f32 1.0, %v644_v28 }
 0x6f4   :  { %645 = vrcp.f32 %v254_v29  ;;  %v266_v36 = vand.u32 2147483648, %v254_v29  ;;  %vm260_vm0 = vweird.f32 %v254_v29  ;;  %v264_v37 = vand.u32 2147483647, %v254_v29 }
 0x6f6   :  { %v267_v39 = vor.u32 1.1754944e-38, %v266_v36  ;;  %vm265_vm2 = vcmp.eq.f32.partialorder %v264_v37, 8.507059e+37 }
 0x6fa   :  { %v646_v30 = vpop.eup %645 }
 0x6fb   :  { %v256_v31 = vmul.f32 %v646_v30, %v254_v29  ;;  %vm261_vm15 = vweird.f32 %v646_v30 }
 0x6fc   :  { %vm262_vm1 = vmor %vm260_vm0, %vm261_vm15 }
 0x6fd   :  { %v257_v33 = vsub.f32 1.0, %v256_v31 }
 0x6ff   :  { %v258_v34 = vmul.f32 %v646_v30, %v257_v33 }
 0x701   :  { %v259_v35 = vadd.f32 %v646_v30, %v258_v34 }
 0x703   :  { %v263_v38 = vsel %vm262_vm1, %v646_v30, %v259_v35 }
 0x704   :  { %v268_v41 = vsel %vm265_vm2, %v267_v39, %v263_v38 }
 0x705   :  { %v282_v46 = vsub.f32 1.0, %v268_v41  ;;  %v288_v48 = vmul.f32 %v268_v41, %v222_v22 }
 0x75b   :  { %v273_v40 = vpop.permute.xlu0 %272 }
 0x75c   :  { %v275_v42 = vmul.f32 %v273_v40, %v268_v41 }
 0x75e   :  { %277 = vrot.lane.b32.xlu1 %v275_v42, %s673_s18 }
 0x7d0   :  { %v278_v43 = vpop.permute.xlu1 %277 }
 0x7d1   :  { %v280_v44 = vadd.f32 %v278_v43, %v702_v5 }
 0x7d3   :  { %647 = vtanh.f32 %v280_v44 }
 0x7d9   :  { %v648_v45 = vpop.eup %647 }
 0x7da   :  { %284 = vrot.lane.b32.xlu2 %v648_v45, %s674_s19 }
 0x834   :  { %v285_v47 = vpop.permute.xlu2 %284 }
 0x835   :  { %v287_v49 = vmul.f32 %v285_v47, %v282_v46 }
 0x837   :  { %v289_v50 = vadd.f32 %v288_v48, %v287_v49 }
 0x839   :  { %291 = vrot.lane.b32.xlu0 %v289_v50, %s674_s19 }
 0x8ab   :  { %v292_v55 = vpop.permute.xlu0 %291 }
 0x8ac   :  { %294 = vst.msk [vmem:[#allocation2 + $0x6] sm:$0x3] %vm87_vm5, %v292_v55  ;;  %610 = vmatmul.msk.f32.vlgmr.msra.gmra.mxu0 %vm89_vm6, %v292_v55 }
 0x8b3   :  { %v563_v56 = vld [vmem:[#allocation2] sm:$0xff] }
 0x8b4   :  { %618 = vmatmul.msk.f32.vlgmr.msrb.gmra.mxu0 %vm89_vm6, %v563_v56 }
 0x929   :  { %v314_v57 = vpop.f32.mrf.mxu0 }
 0x92a   :  { %v337_v58 = vadd.f32 %v314_v57, %v727_v32  ;;  %v317_v62 = vadd.f32 %v314_v57, %v702_v5 }
 0x92c   :  { %339 = vrot.lane.b32.xlu1 %v337_v58, %s673_s18  ;;  %v611_v63 = vmul.f32 -1.442695, %v317_v62 }
 0x92e   :  { %649 = vpow2.f32 %v611_v63 }
 0x931   :  { %v589_v60 = vpop.f32.mrf.mxu0 }
 0x932   :  { %v590_v61 = vadd.f32 %v774_v59, %v589_v60 }
 0x934   :  { %596 = vst.msk [vmem:[%s822_s2] sm:$0xff] %vm595_vm3, %v590_v61  ;;  %v650_v0 = vpop.eup %649 }
 0x935   :  { %v321_v1 = vadd.f32 1.0, %v650_v0 }
 0x937   :  { %651 = vrcp.f32 %v321_v1  ;;  %v333_v8 = vand.u32 2147483648, %v321_v1  ;;  %vm327_vm7 = vweird.f32 %v321_v1  ;;  %v331_v9 = vand.u32 2147483647, %v321_v1 }
 0x939   :  { %v334_v11 = vor.u32 1.1754944e-38, %v333_v8  ;;  %vm332_vm9 = vcmp.eq.f32.partialorder %v331_v9, 8.507059e+37 }
 0x93d   :  { %v652_v2 = vpop.eup %651 }
 0x93e   :  { %v323_v3 = vmul.f32 %v652_v2, %v321_v1  ;;  %vm328_vm4 = vweird.f32 %v652_v2 }
 0x93f   :  { %vm329_vm8 = vmor %vm327_vm7, %vm328_vm4 }
 0x940   :  { %v324_v4 = vsub.f32 1.0, %v323_v3 }
 0x942   :  { %v325_v6 = vmul.f32 %v652_v2, %v324_v4 }
 0x944   :  { %v326_v7 = vadd.f32 %v652_v2, %v325_v6 }
 0x946   :  { %v330_v10 = vsel %vm329_vm8, %v652_v2, %v326_v7 }
 0x947   :  { %v335_v13 = vsel %vm332_vm9, %v334_v11, %v330_v10 }
 0x948   :  { %v349_v18 = vsub.f32 1.0, %v335_v13  ;;  %v355_v20 = vmul.f32 %v335_v13, %v289_v50 }
 0x99e   :  { %v340_v12 = vpop.permute.xlu1 %339 }
 0x99f   :  { %v342_v14 = vmul.f32 %v340_v12, %v335_v13 }
 0x9a1   :  { %344 = vrot.lane.b32.xlu2 %v342_v14, %s673_s18 }
 0x9fb   :  { %v345_v15 = vpop.permute.xlu2 %344 }
 0x9fc   :  { %v347_v16 = vadd.f32 %v345_v15, %v702_v5 }
 0x9fe   :  { %653 = vtanh.f32 %v347_v16 }
 0xa04   :  { %v654_v17 = vpop.eup %653 }
 0xa05   :  { %351 = vrot.lane.b32.xlu0 %v654_v17, %s674_s19 }
 0xa77   :  { %v352_v19 = vpop.permute.xlu0 %351 }
 0xa78   :  { %v354_v21 = vmul.f32 %v352_v19, %v349_v18 }
 0xa7a   :  { %v356_v22 = vadd.f32 %v355_v20, %v354_v21 }
 0xa7c   :  { %358 = vrot.lane.b32.xlu1 %v356_v22, %s674_s19 }
 0xaee   :  { %v359_v23 = vpop.permute.xlu1 %358 }
 0xaef   :  { %361 = vst.msk [vmem:[#allocation2 + $0x8] sm:$0x3] %vm87_vm5, %v359_v23  ;;  %612 = vmatmul.msk.f32.vlgmr.msra.gmra.mxu1 %vm89_vm6, %v359_v23 }
 0xb6c   :  { %v381_v24 = vpop.f32.mrf.mxu1 }
 0xb6d   :  { %v404_v25 = vadd.f32 %v381_v24, %v727_v32  ;;  %v384_v26 = vadd.f32 %v381_v24, %v702_v5 }
 0xb6f   :  { %406 = vrot.lane.b32.xlu2 %v404_v25, %s673_s18  ;;  %v613_v27 = vmul.f32 -1.442695, %v384_v26 }
 0xb71   :  { %655 = vpow2.f32 %v613_v27 }
 0xb77   :  { %v656_v28 = vpop.eup %655 }
 0xb78   :  { %v388_v29 = vadd.f32 1.0, %v656_v28 }
 0xb7a   :  { %657 = vrcp.f32 %v388_v29  ;;  %v400_v36 = vand.u32 2147483648, %v388_v29  ;;  %vm394_vm11 = vweird.f32 %v388_v29  ;;  %v398_v37 = vand.u32 2147483647, %v388_v29 }
 0xb7c   :  { %v401_v39 = vor.u32 1.1754944e-38, %v400_v36  ;;  %vm399_vm13 = vcmp.eq.f32.partialorder %v398_v37, 8.507059e+37 }
 0xb80   :  { %v658_v30 = vpop.eup %657 }
 0xb81   :  { %v390_v31 = vmul.f32 %v658_v30, %v388_v29  ;;  %vm395_vm10 = vweird.f32 %v658_v30 }
 0xb82   :  { %vm396_vm12 = vmor %vm394_vm11, %vm395_vm10 }
 0xb83   :  { %v391_v33 = vsub.f32 1.0, %v390_v31 }
 0xb85   :  { %v392_v34 = vmul.f32 %v658_v30, %v391_v33 }
 0xb87   :  { %v393_v35 = vadd.f32 %v658_v30, %v392_v34 }
 0xb89   :  { %v397_v38 = vsel %vm396_vm12, %v658_v30, %v393_v35 }
 0xb8a   :  { %v402_v41 = vsel %vm399_vm13, %v401_v39, %v397_v38 }
 0xb8b   :  { %v416_v46 = vsub.f32 1.0, %v402_v41  ;;  %v422_v48 = vmul.f32 %v402_v41, %v356_v22 }
 0xbc9   :  { %v407_v40 = vpop.permute.xlu2 %406 }
 0xbca   :  { %v409_v42 = vmul.f32 %v407_v40, %v402_v41 }
 0xbcc   :  { %411 = vrot.lane.b32.xlu0 %v409_v42, %s673_s18 }
 0xc3e   :  { %v412_v43 = vpop.permute.xlu0 %411 }
 0xc3f   :  { %v414_v44 = vadd.f32 %v412_v43, %v702_v5 }
 0xc41   :  { %659 = vtanh.f32 %v414_v44 }
 0xc47   :  { %v660_v45 = vpop.eup %659 }
 0xc48   :  { %418 = vrot.lane.b32.xlu1 %v660_v45, %s674_s19 }
 0xcba   :  { %v419_v47 = vpop.permute.xlu1 %418 }
 0xcbb   :  { %v421_v49 = vmul.f32 %v419_v47, %v416_v46 }
 0xcbd   :  { %v423_v50 = vadd.f32 %v422_v48, %v421_v49 }
 0xcbf   :  { %425 = vrot.lane.b32.xlu2 %v423_v50, %s674_s19 }
 0xd19   :  { %v426_v51 = vpop.permute.xlu2 %425 }
 0xd1a   :  { %428 = vst.msk [vmem:[#allocation2 + $0xa] sm:$0x3] %vm87_vm5, %v426_v51  ;;  %614 = vmatmul.msk.f32.vlgmr.msrb.gmra.mxu2 %vm89_vm6, %v426_v51 }
 0xd9d   :  { %v448_v52 = vpop.f32.mrf.mxu2 }
 0xd9e   :  { %v471_v53 = vadd.f32 %v448_v52, %v727_v32  ;;  %v451_v54 = vadd.f32 %v448_v52, %v702_v5 }
 0xda0   :  { %473 = vrot.lane.b32.xlu0 %v471_v53, %s673_s18  ;;  %v615_v55 = vmul.f32 -1.442695, %v451_v54 }
 0xda2   :  { %661 = vpow2.f32 %v615_v55 }
 0xda8   :  { %v662_v56 = vpop.eup %661 }
 0xda9   :  { %v455_v57 = vadd.f32 1.0, %v662_v56 }
 0xdab   :  { %663 = vrcp.f32 %v455_v57  ;;  %v467_v0 = vand.u32 2147483648, %v455_v57  ;;  %vm461_vm15 = vweird.f32 %v455_v57  ;;  %v465_v1 = vand.u32 2147483647, %v455_v57 }
 0xdad   :  { %v468_v3 = vor.u32 1.1754944e-38, %v467_v0  ;;  %vm466_vm1 = vcmp.eq.f32.partialorder %v465_v1, 8.507059e+37 }
 0xdb1   :  { %v664_v58 = vpop.eup %663 }
 0xdb2   :  { %v457_v60 = vmul.f32 %v664_v58, %v455_v57  ;;  %vm462_vm14 = vweird.f32 %v664_v58 }
 0xdb3   :  { %vm463_vm0 = vmor %vm461_vm15, %vm462_vm14 }
 0xdb4   :  { %v458_v61 = vsub.f32 1.0, %v457_v60 }
 0xdb6   :  { %v459_v62 = vmul.f32 %v664_v58, %v458_v61 }
 0xdb8   :  { %v460_v63 = vadd.f32 %v664_v58, %v459_v62 }
 0xdba   :  { %v464_v2 = vsel %vm463_vm0, %v664_v58, %v460_v63 }
 0xdbb   :  { %v469_v6 = vsel %vm466_vm1, %v468_v3, %v464_v2 }
 0xdbc   :  { %v483_v11 = vsub.f32 1.0, %v469_v6  ;;  %v489_v13 = vmul.f32 %v469_v6, %v423_v50 }
 0xe12   :  { %v474_v4 = vpop.permute.xlu0 %473 }
 0xe13   :  { %v476_v7 = vmul.f32 %v474_v4, %v469_v6 }
 0xe15   :  { %478 = vrot.lane.b32.xlu1 %v476_v7, %s673_s18 }
 0xe87   :  { %v479_v8 = vpop.permute.xlu1 %478 }
 0xe88   :  { %v481_v9 = vadd.f32 %v479_v8, %v702_v5 }
 0xe8a   :  { %665 = vtanh.f32 %v481_v9 }
 0xe90   :  { %v666_v10 = vpop.eup %665 }
 0xe91   :  { %485 = vrot.lane.b32.xlu2 %v666_v10, %s674_s19 }
 0xeeb   :  { %v486_v12 = vpop.permute.xlu2 %485 }
 0xeec   :  { %v488_v14 = vmul.f32 %v486_v12, %v483_v11 }
 0xeee   :  { %v490_v15 = vadd.f32 %v489_v13, %v488_v14 }
 0xef0   :  { %492 = vrot.lane.b32.xlu0 %v490_v15, %s674_s19 }
 0xf62   :  { %v493_v16 = vpop.permute.xlu0 %492 }
 0xf63   :  { %495 = vst.msk [vmem:[#allocation2 + $0xc] sm:$0x3] %vm87_vm5, %v493_v16  ;;  %616 = vmatmul.msk.f32.vlgmr.msrb.gmra.mxu3 %vm89_vm6, %v493_v16 }
 0xfe6   :  { %v515_v17 = vpop.f32.mrf.mxu3 }
 0xfe7   :  { %v538_v18 = vadd.f32 %v515_v17, %v727_v32  ;;  %v518_v19 = vadd.f32 %v515_v17, %v702_v5 }
 0xfe9   :  { %540 = vrot.lane.b32.xlu1 %v538_v18, %s673_s18  ;;  %v617_v20 = vmul.f32 -1.442695, %v518_v19 }
 0xfeb   :  { %667 = vpow2.f32 %v617_v20 }
 0xff1   :  { %v668_v21 = vpop.eup %667 }
 0xff2   :  { %v522_v22 = vadd.f32 1.0, %v668_v21 }
 0xff4   :  { %669 = vrcp.f32 %v522_v22  ;;  %v534_v28 = vand.u32 2147483648, %v522_v22  ;;  %vm528_vm4 = vweird.f32 %v522_v22  ;;  %v532_v29 = vand.u32 2147483647, %v522_v22 }
 0xff6   :  { %v535_v30 = vor.u32 1.1754944e-38, %v534_v28  ;;  %vm533_vm8 = vcmp.eq.f32.partialorder %v532_v29, 8.507059e+37 }
 0xffa   :  { %v670_v23 = vpop.eup %669 }
 0xffb   :  { %v524_v24 = vmul.f32 %v670_v23, %v522_v22  ;;  %vm529_vm2 = vweird.f32 %v670_v23 }
 0xffc   :  { %vm530_vm7 = vmor %vm528_vm4, %vm529_vm2 }
 0xffd   :  { %v525_v25 = vsub.f32 1.0, %v524_v24 }
 0xfff   :  { %v526_v26 = vmul.f32 %v670_v23, %v525_v25 }
0x1001   :  { %v527_v27 = vadd.f32 %v670_v23, %v526_v26 }
0x1003   :  { %v531_v32 = vsel %vm530_vm7, %v670_v23, %v527_v27 }
0x1004   :  { %v536_v33 = vsel %vm533_vm8, %v535_v30, %v531_v32 }
0x1005   :  { %v550_v38 = vsub.f32 1.0, %v536_v33  ;;  %v556_v40 = vmul.f32 %v536_v33, %v490_v15 }
0x105b   :  { %v541_v31 = vpop.permute.xlu1 %540 }
0x105c   :  { %v543_v34 = vmul.f32 %v541_v31, %v536_v33 }
0x105e   :  { %545 = vrot.lane.b32.xlu2 %v543_v34, %s673_s18 }
0x10b8   :  { %v546_v35 = vpop.permute.xlu2 %545 }
0x10b9   :  { %v548_v36 = vadd.f32 %v546_v35, %v702_v5 }
0x10bb   :  { %671 = vtanh.f32 %v548_v36 }
0x10c1   :  { %v672_v37 = vpop.eup %671 }
0x10c2   :  { %552 = vrot.lane.b32.xlu0 %v672_v37, %s674_s19 }
0x1134   :  { %v553_v39 = vpop.permute.xlu0 %552 }
0x1135   :  { %v555_v41 = vmul.f32 %v553_v39, %v550_v38 }
0x1137   :  { %v557_v42 = vadd.f32 %v556_v40, %v555_v41 }
0x1139   :  { %559 = vrot.lane.b32.xlu1 %v557_v42, %s674_s19 }
0x11ab   :  { %v560_v43 = vpop.permute.xlu1 %559 }
0x11ac   :  { %562 = vst.msk [vmem:[#allocation2 + $0xe] sm:$0x3] %vm87_vm5, %v560_v43 }
0x11b3   :  { %v564_v44 = vld [vmem:[#allocation2 + $0x8] sm:$0xff] }
0x11b4   :  { %619 = vmatmul.msk.f32.gmra.mxu0 %vm89_vm6, %v564_v44 }
0x1231   :  { %v592_v45 = vpop.f32.mrf.mxu0 }
0x1232   :  { %v593_v5 = vadd.f32 %v774_v59, %v592_v45 }
0x1234   :  { %597 = vst.msk [vmem:[%s822_s2 + $0x8] sm:$0xff] %vm595_vm3, %v593_v5 }

</bundles_post_ra>
